<compile_context>
chip_gen: v5e
topology: v5e:2x2
jax: 0.10.0
libtpu: 0.0.40
codegen_flags: <defaults>
</compile_context>

<pallas_src>
import jax
import jax.numpy as jnp
from jax import lax
from jax.experimental import pallas as pl
from jax.experimental.pallas import tpu as pltpu

LANES = 128   # lane width of one channel segment
KTAPS = 3     # conv kernel size (fixed, see TODO below)


def _round_up(x, m):
    return (x + m - 1) // m * m


def _choose_tl(L, N, max_tl=512):
    """L-tile size: big tiles amortize per-step overhead; only split short sequences
    when the batch axis alone cannot feed both v7x TensorCores."""
    L8 = _round_up(L, 8)
    if L8 > max_tl:
        return max_tl
    if N < 2 and L8 >= 16:
        return _round_up((L8 + 1) // 2, 8)
    return L8


# ----------------------------------------------------------------------------
# Pallas kernel factory: one DenseLayer1D step over one (batch, L-tile) block.
# ----------------------------------------------------------------------------
def _make_layer_kernel(S, TL, L_real, L_pad, open_is_input):
    has_pad_rows = (L_pad != L_real)

    def kernel(*refs):
        # refs: [0:S) segment tiles (1,TL,128) bf16 | S: halo_prev (1,1,S,128) bf16
        #       S+1: halo_next | S+2: scale (S,128) f32 | S+3: shift (S,128) f32
        #       S+4: fused weight (S*384,128) bf16
        #       S+5: out segment (1,TL,128) bf16 | S+6: boundary rows (1,1,2,128) bf16
        #       S+7: stats partials (1,1,2,128) f32 | S+8: scratch (TL,S*384) bf16
        seg_refs = refs[0:S]
        hp_ref = refs[S]
        hn_ref = refs[S + 1]
        scale_ref = refs[S + 2]
        shift_ref = refs[S + 3]
        w_ref = refs[S + 4]
        out_ref = refs[S + 5]
        edge_ref = refs[S + 6]
        stats_ref = refs[S + 7]
        stk = refs[S + 8]

        lt = pl.program_id(1)
        row_local = lax.broadcasted_iota(jnp.int32, (TL, 1), 0)
        row_glob = lt * TL + row_local

        for s in range(S):                          # static loop over 128-wide segments
            sc = scale_ref[s:s + 1, :]              # folded BN scale (0 on unused lanes)
            sh = shift_ref[s:s + 1, :]              # folded BN shift
            x = seg_refs[s][0].astype(jnp.float32)  # (TL,128)
            a = jnp.maximum(x * sc + sh, 0.0)       # BN + ReLU (f32 VPU math)
            if has_pad_rows:                        # zero the rows beyond the real length
                a = jnp.where(row_glob < L_real, a, 0.0)

            # 1-row conv halos, BN+ReLU'd and PRE-masked with the (scalar) tile
            # condition so each tap needs a single full-tile select (merged selects).
            a_pr = jnp.maximum(hp_ref[0, 0, s:s + 1, :].astype(jnp.float32) * sc + sh, 0.0)
            a_nr = jnp.maximum(hn_ref[0, 0, s:s + 1, :].astype(jnp.float32) * sc + sh, 0.0)
            a_pr = jnp.where(lt > 0, a_pr, 0.0)                  # conv zero-pad at l = 0
            a_nr = jnp.where((lt + 1) * TL < L_real, a_nr, 0.0)  # conv zero-pad at l = L-1

            prev = pltpu.roll(a, 1, axis=0)                      # row r <- a[r-1]
            prev = jnp.where(row_local == 0, a_pr, prev)
            nxt = pltpu.roll(a, TL - 1, axis=0)                  # row r <- a[r+1]
            nxt = jnp.where(row_local == TL - 1, a_nr, nxt)

            # Stage the three taps of this segment into the shared long-K operand.
            base = s * KTAPS * LANES
            stk[:, base:base + LANES] = prev.astype(jnp.bfloat16)
            stk[:, base + LANES:base + 2 * LANES] = a.astype(jnp.bfloat16)
            stk[:, base + 2 * LANES:base + 3 * LANES] = nxt.astype(jnp.bfloat16)

        # Single long-K MXU matmul: (TL, S*384) x (S*384, 128), bf16 in, f32 acc.
        acc = jnp.dot(stk[...], w_ref[...], preferred_element_type=jnp.float32)

        # Pack the new channels into the open segment: weight columns outside
        # [off, off+G) are zero and the stored unfilled lanes are exact zeros, so a
        # plain add rebuilds the full 128-lane tile (lane-dense unmasked store).
        if open_is_input:
            out_f = acc + seg_refs[S - 1][0].astype(jnp.float32)
        else:
            out_f = acc
        out_bf = out_f.astype(jnp.bfloat16)
        out_ref[0] = out_bf
        # Boundary rows -> next layer's conv halos (no strided re-read of the segment).
        edge_ref[0, 0] = jnp.concatenate([out_bf[0:1, :], out_bf[TL - 1:TL, :]], axis=0)

        # Fused BatchNorm batch-statistic partials of the (updated) segment.
        # NOTE: one-pass E[x^2]-m^2 finish in f32 (clamped >= 0) in the JAX glue.
        om = out_f
        if has_pad_rows:
            om = jnp.where(row_glob < L_real, om, 0.0)
        s1 = jnp.sum(om, axis=0, keepdims=True)
        s2 = jnp.sum(om * om, axis=0, keepdims=True)
        stats_ref[0, 0] = jnp.concatenate([s1, s2], axis=0)

    return kernel


# ----------------------------------------------------------------------------
# pallas_call wrapper for one DenseLayer1D
# ----------------------------------------------------------------------------
def _dense_layer_pallas(segments, hp_all, hn_all, scale_all, shift_all, w_all,
                        *, TL, NT, L_real, open_is_input):
    S = len(segments)
    N, L_pad, _ = segments[0].shape
    kernel = _make_layer_kernel(S, TL, L_real, L_pad, open_is_input)

    seg_spec = pl.BlockSpec((1, TL, LANES), lambda n, lt: (n, lt, 0))
    halo_spec = pl.BlockSpec((1, 1, S, LANES), lambda n, lt: (n, lt, 0, 0))
    vec_spec = pl.BlockSpec((S, LANES), lambda n, lt: (0, 0))
    w_spec = pl.BlockSpec((S * KTAPS * LANES, LANES), lambda n, lt: (0, 0))

    in_specs = [seg_spec] * S + [halo_spec, halo_spec, vec_spec, vec_spec, w_spec]
    out_specs = [
        pl.BlockSpec((1, TL, LANES), lambda n, lt: (n, lt, 0)),
        pl.BlockSpec((1, 1, 2, LANES), lambda n, lt: (n, lt, 0, 0)),
        pl.BlockSpec((1, 1, 2, LANES), lambda n, lt: (n, lt, 0, 0)),
    ]
    out_shape = (
        jax.ShapeDtypeStruct((N, L_pad, LANES), jnp.bfloat16),   # updated / new segment
        jax.ShapeDtypeStruct((N, NT, 2, LANES), jnp.bfloat16),   # boundary rows (halos)
        jax.ShapeDtypeStruct((N, NT, 2, LANES), jnp.float32),    # BN stat partials
    )
    scratch = [pltpu.VMEM((TL, S * KTAPS * LANES), jnp.bfloat16)]

    # Computed per-step VMEM footprint (review item) -> explicit, tight budget.
    per_step = (S * TL * LANES * 2            # segment tiles (bf16)
                + 2 * S * LANES * 2           # halos
                + 2 * S * LANES * 4           # scale / shift
                + S * KTAPS * LANES * LANES * 2   # fused weights
                + TL * LANES * 2 + 2 * LANES * 2 + 2 * LANES * 4)  # outputs
    scratch_bytes = TL * S * KTAPS * LANES * 2
    budget = 2 * per_step + scratch_bytes     # double-buffered pipeline + scratch
    vmem_limit = int(min(max(2 * budget + (4 << 20), 8 << 20), 48 << 20))

    return pl.pallas_call(
        kernel,
        out_shape=out_shape,
        grid_spec=pltpu.PrefetchScalarGridSpec(
            num_scalar_prefetch=0,
            grid=(N, NT),
            in_specs=in_specs,
            out_specs=out_specs,
            scratch_shapes=scratch,
        ),
        input_output_aliases=({S - 1: 0} if open_is_input else {}),
        compiler_params=pltpu.CompilerParams(
            dimension_semantics=("parallel", "parallel"),
            vmem_limit_bytes=vmem_limit,
        ),
    )(*segments, hp_all, hn_all, scale_all, shift_all, w_all)


# ----------------------------------------------------------------------------
# Halo bookkeeping (tiny side arrays, (N, NT, 128) per segment and direction)
# ----------------------------------------------------------------------------
def _halos_from_segment(seg, TL, NT):
    """Initial halos from a padded (N, L_pad, 128) segment (input segments only)."""
    N = seg.shape[0]
    z = jnp.zeros((N, 1, LANES), seg.dtype)
    last_rows = seg[:, TL - 1::TL, :][:, :NT - 1, :]   # row TL*lt - 1 for lt >= 1
    first_rows = seg[:, TL::TL, :]                     # row TL*(lt+1) for lt < NT-1
    hp = jnp.concatenate([z, last_rows], axis=1)
    hn = jnp.concatenate([first_rows, z], axis=1)
    return hp, hn


def _halos_from_edges(edges, NT):
    """Halos of the segment a layer just wrote, from its boundary-row output."""
    N = edges.shape[0]
    z = jnp.zeros((N, 1, LANES), edges.dtype)
    hp = jnp.concatenate([z, edges[:, :NT - 1, 1, :]], axis=1)
    hn = jnp.concatenate([edges[:, 1:, 0, :], z], axis=1)
    return hp, hn


# ----------------------------------------------------------------------------
# DenseBlock1D parameters + forward
# ----------------------------------------------------------------------------
def init_dense_block_params(key, num_layers, in_channels, growth_rate, kernel_size=3):
    """Deterministic synthetic parameters matching the PyTorch module shapes."""
    params = []
    c = in_channels
    for _ in range(num_layers):
        key, kw, kg, kb = jax.random.split(key, 4)
        params.append({
            "gamma": 1.0 + 0.1 * jax.random.normal(kg, (c,), jnp.float32),
            "beta": 0.1 * jax.random.normal(kb, (c,), jnp.float32),
            "conv_w": 0.2 * jax.random.normal(kw, (growth_rate, c, kernel_size), jnp.float32),
        })
        c += growth_rate
    return params, c


def dense_block1d_forward(x_ncl, params, eps=1e-5):
    """DenseBlock1D forward: (N, C, L) -> (N, C + num_layers*growth_rate, L)."""
    N, C_in, L = x_ncl.shape
    x_nlc = jnp.transpose(x_ncl, (0, 2, 1)).astype(jnp.float32)   # channels-last

    TL = _choose_tl(L, N)
    NT = -(-L // TL)
    L_pad = NT * TL

    # Lane-dense packed bf16 segments + per-segment BN stats + per-segment halos.
    segments, seg_cnt, seg_mean, seg_var, seg_hp, seg_hn = [], [], [], [], [], []

    for c0 in range(0, C_in, LANES):
        w = min(LANES, C_in - c0)
        raw = x_nlc[:, :, c0:c0 + w]
        m = jnp.mean(raw, axis=(0, 1))
        v = jnp.mean((raw - m) ** 2, axis=(0, 1))        # biased var (BN training mode)
        seg = jnp.pad(raw, ((0, 0), (0, L_pad - L), (0, LANES - w))).astype(jnp.bfloat16)
        hp, hn = _halos_from_segment(seg, TL, NT)
        segments.append(seg)
        seg_cnt.append(w)
        seg_mean.append(jnp.pad(m, (0, LANES - w)))
        seg_var.append(jnp.pad(v, (0, LANES - w), constant_values=1.0))
        seg_hp.append(hp)
        seg_hn.append(hn)

    for layer in params:
        gamma, beta, conv_w = layer["gamma"], layer["beta"], layer["conv_w"]
        G, C_layer, K = conv_w.shape
        # TODO(synk): kernel_size != 3 needs a generalized tap stack; growth_rate > 128
        # would need the layer output split across several lane segments.
        assert K == KTAPS and G <= LANES and C_layer == sum(seg_cnt)

        # Channel packing: write the G new channels into the open segment if they fit,
        # otherwise start a new segment (channel order is always preserved).
        if seg_cnt[-1] + G <= LANES:
            off, open_is_input = seg_cnt[-1], True
        else:
            off, open_is_input = 0, False
        S = len(segments)

        # Fold BN (gamma/beta + cached batch stats) into per-segment (scale, shift)
        # (zero on unfilled lanes so padded lanes stay exactly zero after ReLU) and
        # build the fused long-K weight with output columns placed at [off, off+G).
        scales, shifts, wblocks = [], [], []
        base = 0
        for s in range(S):
            cnt = seg_cnt[s]
            g_seg = jnp.pad(gamma[base:base + cnt], (0, LANES - cnt))
            b_seg = jnp.pad(beta[base:base + cnt], (0, LANES - cnt))
            sc = g_seg * lax.rsqrt(seg_var[s] + eps)
            sh = b_seg - seg_mean[s] * sc
            scales.append(sc)
            shifts.append(sh)
            wk = jnp.transpose(conv_w[:, base:base + cnt, :], (2, 1, 0))   # (3, cnt, G)
            wk = jnp.pad(wk, ((0, 0), (0, LANES - cnt), (off, LANES - off - G)))
            wblocks.append(wk.reshape(KTAPS * LANES, LANES))
            base += cnt
        scale_all = jnp.stack(scales)                        # (S, 128) f32
        shift_all = jnp.stack(shifts)                        # (S, 128) f32
        w_all = jnp.concatenate(wblocks, 0).astype(jnp.bfloat16)   # (S*384, 128) bf16

        hp_all = jnp.stack(seg_hp, axis=2)                   # (N, NT, S, 128) bf16
        hn_all = jnp.stack(seg_hn, axis=2)

        new_seg, edges, stats = _dense_layer_pallas(
            segments, hp_all, hn_all, scale_all, shift_all, w_all,
            TL=TL, NT=NT, L_real=L, open_is_input=open_is_input)

        # Finish the fused BN-statistic reduction for the new channels (tiny glue).
        s1 = jnp.sum(stats[:, :, 0, :], axis=(0, 1))
        s2 = jnp.sum(stats[:, :, 1, :], axis=(0, 1))
        cnt_nl = float(N * L)
        m_new = s1 / cnt_nl
        v_new = jnp.maximum(s2 / cnt_nl - m_new * m_new, 0.0)
        hp_new, hn_new = _halos_from_edges(edges, NT)

        if open_is_input:
            segments[-1] = new_seg
            seg_mean[-1] = seg_mean[-1].at[off:off + G].set(m_new[off:off + G])
            seg_var[-1] = seg_var[-1].at[off:off + G].set(v_new[off:off + G])
            seg_hp[-1], seg_hn[-1] = hp_new, hn_new
            seg_cnt[-1] = off + G
        else:
            segments.append(new_seg)
            seg_mean.append(jnp.zeros((LANES,), jnp.float32).at[:G].set(m_new[:G]))
            seg_var.append(jnp.ones((LANES,), jnp.float32).at[:G].set(v_new[:G]))
            seg_hp.append(hp_new)
            seg_hn.append(hn_new)
            seg_cnt.append(G)

    # One final assembly of the real channels (single copy at the end).
    y_nlc = jnp.concatenate(
        [seg[:, :L, :c].astype(jnp.float32) for seg, c in zip(segments, seg_cnt)],
        axis=-1)
    return jnp.transpose(y_nlc, (0, 2, 1))


# ----------------------------------------------------------------------------
# Pure-JAX reference (same math, no Pallas) for sanity checks
# ----------------------------------------------------------------------------
def dense_block1d_reference(x_ncl, params, eps=1e-5, match_bf16=False):
    x = x_ncl.astype(jnp.float32)
    if match_bf16:
        x = x.astype(jnp.bfloat16).astype(jnp.float32)   # kernel stores segments in bf16
    for layer in params:
        mean = jnp.mean(x, axis=(0, 2))
        var = jnp.mean((x - mean[None, :, None]) ** 2, axis=(0, 2))
        scale = layer["gamma"] * lax.rsqrt(var + eps)
        shift = layer["beta"] - mean * scale
        a = jnp.maximum(x * scale[None, :, None] + shift[None, :, None], 0.0)
        w = layer["conv_w"]
        if match_bf16:
            a = a.astype(jnp.bfloat16).astype(jnp.float32)
            w = w.astype(jnp.bfloat16).astype(jnp.float32)
        out = lax.conv_general_dilated(
            a, w, window_strides=(1,), padding=[(1, 1)],
            dimension_numbers=("NCH", "OIH", "NCH"))
        if match_bf16:
            out = out.astype(jnp.bfloat16).astype(jnp.float32)
        x = jnp.concatenate([x, out], axis=1)
    return x


def _check(x, params, name):
    fwd = jax.jit(dense_block1d_forward)
    y = jax.block_until_ready(fwd(x, params))
    c_out = x.shape[1] + len(params) * params[0]["conv_w"].shape[0]
    assert y.shape == (x.shape[0], c_out, x.shape[2]), (name, y.shape)

    # vs. a reference that mimics the kernel's bf16 storage / bf16 MXU inputs
    y_bf = dense_block1d_reference(x, params, match_bf16=True)
    rel_bf = float(jnp.linalg.norm(y - y_bf) / jnp.linalg.norm(y_bf))
    assert rel_bf < 3e-2, (name, rel_bf)

    # loose global check vs. exact f32 module semantics
    y_f32 = dense_block1d_reference(x, params, match_bf16=False)
    rel = float(jnp.linalg.norm(y - y_f32) / jnp.linalg.norm(y_f32))
    assert rel < 5e-2, (name, rel)


if __name__ == "__main__":
    key = jax.random.PRNGKey(0)

    # Case A: small shapes consistent with the module: batch=2, in_channels=4, L=16,
    # 3 layers, growth_rate=4 -> out_channels = 16 (single L tile, single segment).
    key, kx, kp = jax.random.split(key, 3)
    x_a = jax.random.normal(kx, (2, 4, 16), jnp.float32)
    params_a, c_out_a = init_dense_block_params(kp, num_layers=3, in_channels=4, growth_rate=4)
    assert c_out_a == 16
    _check(x_a, params_a, "case_a")

    # Case B: exercises the multi-tile halo path, padded length rows, multi-segment
    # inputs and the open-a-new-segment packing branch (124 + 8 > 128).
    key, kx, kp = jax.random.split(key, 3)
    x_b = jax.random.normal(kx, (1, 124, 40), jnp.float32)
    params_b, _ = init_dense_block_params(kp, num_layers=2, in_channels=124, growth_rate=8)
    _check(x_b, params_b, "case_b")

    print("KERNEL_OK")
</pallas_src>

<mosaic_0001>
module attributes {stable_mosaic.version = 11 : i64} {
  func.func @kernel(%arg0: i32, %arg1: i32, %arg2: memref<1x16x128xbf16, #tpu.memory_space<vmem>>, %arg3: memref<1x1x1x128xbf16, #tpu.memory_space<vmem>>, %arg4: memref<1x1x1x128xbf16, #tpu.memory_space<vmem>>, %arg5: memref<1x128xf32, #tpu.memory_space<vmem>>, %arg6: memref<1x128xf32, #tpu.memory_space<vmem>>, %arg7: memref<384x128xbf16, #tpu.memory_space<vmem>>, %arg8: memref<1x16x128xbf16, #tpu.memory_space<vmem>>, %arg9: memref<1x1x2x128xbf16, #tpu.memory_space<vmem>>, %arg10: memref<1x1x2x128xf32, #tpu.memory_space<vmem>>, %arg11: memref<16x384xbf16, #tpu.memory_space<vmem>>) attributes {dimension_semantics = [#tpu.dimension_semantics<parallel>, #tpu.dimension_semantics<parallel>], iteration_bounds = array<i64: 2, 1>, scalar_prefetch = 0 : i64, scratch_operands = 1 : i64, tpu.core_type = #tpu.core_type<tc>, window_params = [{transform_indices = @transform_0, window_bounds = array<i64: 1, 16, 128>}, {transform_indices = @transform_1, window_bounds = array<i64: 1, 1, 1, 128>}, {transform_indices = @transform_2, window_bounds = array<i64: 1, 1, 1, 128>}, {pipeline_mode = #tpu.pipeline_mode<synchronous>, transform_indices = @transform_3, window_bounds = array<i64: 1, 128>}, {pipeline_mode = #tpu.pipeline_mode<synchronous>, transform_indices = @transform_4, window_bounds = array<i64: 1, 128>}, {pipeline_mode = #tpu.pipeline_mode<synchronous>, transform_indices = @transform_5, window_bounds = array<i64: 384, 128>}, {transform_indices = @transform_6, window_bounds = array<i64: 1, 16, 128>}, {transform_indices = @transform_7, window_bounds = array<i64: 1, 1, 2, 128>}, {transform_indices = @transform_8, window_bounds = array<i64: 1, 1, 2, 128>}]} {
    %0 = tpu.iota {dimensions = array<i32: 0>} : vector<16x1xi32>
    %c0 = arith.constant 0 : index
    %c0_0 = arith.constant 0 : index
    %1 = vector.load %arg5[%c0, %c0_0] : memref<1x128xf32, #tpu.memory_space<vmem>>, vector<1x128xf32>
    %c0_1 = arith.constant 0 : index
    %c0_2 = arith.constant 0 : index
    %2 = vector.load %arg6[%c0_1, %c0_2] : memref<1x128xf32, #tpu.memory_space<vmem>>, vector<1x128xf32>
    %c0_3 = arith.constant 0 : index
    %c0_4 = arith.constant 0 : index
    %c0_5 = arith.constant 0 : index
    %3 = vector.load %arg2[%c0_3, %c0_4, %c0_5] : memref<1x16x128xbf16, #tpu.memory_space<vmem>>, vector<1x16x128xbf16>
    %4 = vector.shape_cast %3 : vector<1x16x128xbf16> to vector<16x128xbf16>
    %5 = arith.extf %4 : vector<16x128xbf16> to vector<16x128xf32>
    %6 = vector.broadcast %1 : vector<1x128xf32> to vector<16x128xf32>
    %7 = arith.mulf %5, %6 : vector<16x128xf32>
    %8 = vector.broadcast %2 : vector<1x128xf32> to vector<16x128xf32>
    %9 = arith.addf %7, %8 : vector<16x128xf32>
    %cst = arith.constant 0.000000e+00 : f32
    %10 = vector.broadcast %cst : f32 to vector<16x128xf32>
    %11 = arith.maximumf %9, %10 : vector<16x128xf32>
    %c0_6 = arith.constant 0 : index
    %c0_7 = arith.constant 0 : index
    %c0_8 = arith.constant 0 : index
    %c0_9 = arith.constant 0 : index
    %12 = vector.load %arg3[%c0_6, %c0_7, %c0_8, %c0_9] : memref<1x1x1x128xbf16, #tpu.memory_space<vmem>>, vector<1x1x1x128xbf16>
    %13 = vector.shape_cast %12 : vector<1x1x1x128xbf16> to vector<1x128xbf16>
    %14 = arith.extf %13 : vector<1x128xbf16> to vector<1x128xf32>
    %15 = arith.mulf %14, %1 : vector<1x128xf32>
    %16 = arith.addf %15, %2 : vector<1x128xf32>
    %cst_10 = arith.constant 0.000000e+00 : f32
    %17 = vector.broadcast %cst_10 : f32 to vector<1x128xf32>
    %18 = arith.maximumf %16, %17 : vector<1x128xf32>
    %c0_11 = arith.constant 0 : index
    %c0_12 = arith.constant 0 : index
    %c0_13 = arith.constant 0 : index
    %c0_14 = arith.constant 0 : index
    %19 = vector.load %arg4[%c0_11, %c0_12, %c0_13, %c0_14] : memref<1x1x1x128xbf16, #tpu.memory_space<vmem>>, vector<1x1x1x128xbf16>
    %20 = vector.shape_cast %19 : vector<1x1x1x128xbf16> to vector<1x128xbf16>
    %21 = arith.extf %20 : vector<1x128xbf16> to vector<1x128xf32>
    %22 = arith.mulf %21, %1 : vector<1x128xf32>
    %23 = arith.addf %22, %2 : vector<1x128xf32>
    %cst_15 = arith.constant 0.000000e+00 : f32
    %24 = vector.broadcast %cst_15 : f32 to vector<1x128xf32>
    %25 = arith.maximumf %23, %24 : vector<1x128xf32>
    %c0_i32 = arith.constant 0 : i32
    %26 = arith.cmpi sgt, %arg1, %c0_i32 : i32
    %cst_16 = arith.constant 0.000000e+00 : f32
    %27 = vector.broadcast %cst_16 : f32 to vector<1x128xf32>
    %28 = arith.select %26, %18, %27 : vector<1x128xf32>
    %c1_i32 = arith.constant 1 : i32
    %29 = arith.addi %arg1, %c1_i32 : i32
    %c16_i32 = arith.constant 16 : i32
    %30 = arith.muli %29, %c16_i32 : i32
    %c16_i32_17 = arith.constant 16 : i32
    %31 = arith.cmpi slt, %30, %c16_i32_17 : i32
    %cst_18 = arith.constant 0.000000e+00 : f32
    %32 = vector.broadcast %cst_18 : f32 to vector<1x128xf32>
    %33 = arith.select %31, %25, %32 : vector<1x128xf32>
    %c1_i32_19 = arith.constant 1 : i32
    %34 = tpu.dynamic_rotate %11 by %c1_i32_19 dim 0 : vector<16x128xf32>, i32 -> vector<16x128xf32>
    %c0_i32_20 = arith.constant 0 : i32
    %35 = vector.broadcast %c0_i32_20 : i32 to vector<16x1xi32>
    %36 = arith.cmpi eq, %0, %35 : vector<16x1xi32>
    %37 = vector.shape_cast %36 : vector<16x1xi1> to vector<16x1xi1>
    %38 = vector.broadcast %37 : vector<16x1xi1> to vector<16x128xi1>
    %39 = vector.shape_cast %28 : vector<1x128xf32> to vector<1x128xf32>
    %40 = vector.broadcast %39 : vector<1x128xf32> to vector<16x128xf32>
    %41 = arith.select %38, %40, %34 : vector<16x128xi1>, vector<16x128xf32>
    %c15_i32 = arith.constant 15 : i32
    %42 = tpu.dynamic_rotate %11 by %c15_i32 dim 0 : vector<16x128xf32>, i32 -> vector<16x128xf32>
    %c15_i32_21 = arith.constant 15 : i32
    %43 = vector.broadcast %c15_i32_21 : i32 to vector<16x1xi32>
    %44 = arith.cmpi eq, %0, %43 : vector<16x1xi32>
    %45 = vector.shape_cast %44 : vector<16x1xi1> to vector<16x1xi1>
    %46 = vector.broadcast %45 : vector<16x1xi1> to vector<16x128xi1>
    %47 = vector.shape_cast %33 : vector<1x128xf32> to vector<1x128xf32>
    %48 = vector.broadcast %47 : vector<1x128xf32> to vector<16x128xf32>
    %49 = arith.select %46, %48, %42 : vector<16x128xi1>, vector<16x128xf32>
    %50 = arith.truncf %41 : vector<16x128xf32> to vector<16x128xbf16>
    %c0_22 = arith.constant 0 : index
    %c0_23 = arith.constant 0 : index
    %51 = vector.load %arg11[%c0_22, %c0_23] : memref<16x384xbf16, #tpu.memory_space<vmem>>, vector<16x128xbf16>
    tpu.vector_store %arg11[%c0_22, %c0_23], %50 {strides = array<i32>} : memref<16x384xbf16, #tpu.memory_space<vmem>>, vector<16x128xbf16>,
    %52 = arith.truncf %11 : vector<16x128xf32> to vector<16x128xbf16>
    %c0_24 = arith.constant 0 : index
    %c128 = arith.constant 128 : index
    %53 = vector.load %arg11[%c0_24, %c128] : memref<16x384xbf16, #tpu.memory_space<vmem>>, vector<16x128xbf16>
    tpu.vector_store %arg11[%c0_24, %c128], %52 {strides = array<i32>} : memref<16x384xbf16, #tpu.memory_space<vmem>>, vector<16x128xbf16>,
    %54 = arith.truncf %49 : vector<16x128xf32> to vector<16x128xbf16>
    %c0_25 = arith.constant 0 : index
    %c256 = arith.constant 256 : index
    %55 = vector.load %arg11[%c0_25, %c256] : memref<16x384xbf16, #tpu.memory_space<vmem>>, vector<16x128xbf16>
    tpu.vector_store %arg11[%c0_25, %c256], %54 {strides = array<i32>} : memref<16x384xbf16, #tpu.memory_space<vmem>>, vector<16x128xbf16>,
    %c0_26 = arith.constant 0 : index
    %c0_27 = arith.constant 0 : index
    %56 = vector.load %arg11[%c0_26, %c0_27] : memref<16x384xbf16, #tpu.memory_space<vmem>>, vector<16x384xbf16>
    %c0_28 = arith.constant 0 : index
    %c0_29 = arith.constant 0 : index
    %57 = vector.load %arg7[%c0_28, %c0_29] : memref<384x128xbf16, #tpu.memory_space<vmem>>, vector<384x128xbf16>
    %cst_30 = arith.constant dense<0.000000e+00> : vector<16x128xf32>
    %58 = tpu.matmul %56, %57, %cst_30 {dimension_numbers = #tpu.dot_dimension_numbers<[1], [0], [0], [1], [0, 0, 1, 1], [], []>} : vector<16x384xbf16>, vector<384x128xbf16>, vector<16x128xf32> -> vector<16x128xf32>
    %c0_31 = arith.constant 0 : index
    %c0_32 = arith.constant 0 : index
    %c0_33 = arith.constant 0 : index
    %59 = vector.load %arg2[%c0_31, %c0_32, %c0_33] : memref<1x16x128xbf16, #tpu.memory_space<vmem>>, vector<1x16x128xbf16>
    %60 = vector.shape_cast %59 : vector<1x16x128xbf16> to vector<16x128xbf16>
    %61 = arith.extf %60 : vector<16x128xbf16> to vector<16x128xf32>
    %62 = arith.addf %58, %61 : vector<16x128xf32>
    %63 = arith.truncf %62 : vector<16x128xf32> to vector<16x128xbf16>
    %c0_34 = arith.constant 0 : index
    %c0_35 = arith.constant 0 : index
    %c0_36 = arith.constant 0 : index
    %64 = vector.load %arg8[%c0_34, %c0_35, %c0_36] : memref<1x16x128xbf16, #tpu.memory_space<vmem>>, vector<1x16x128xbf16>
    %65 = vector.shape_cast %64 : vector<1x16x128xbf16> to vector<16x128xbf16>
    %66 = vector.shape_cast %63 : vector<16x128xbf16> to vector<1x16x128xbf16>
    tpu.vector_store %arg8[%c0_34, %c0_35, %c0_36], %66 {strides = array<i32>} : memref<1x16x128xbf16, #tpu.memory_space<vmem>>, vector<1x16x128xbf16>,
    %67 = vector.extract_strided_slice %63 {offsets = [0, 0], sizes = [1, 128], strides = [1, 1]} : vector<16x128xbf16> to vector<1x128xbf16>
    %68 = vector.extract_strided_slice %63 {offsets = [15, 0], sizes = [1, 128], strides = [1, 1]} : vector<16x128xbf16> to vector<1x128xbf16>
    %69 = tpu.concatenate %67, %68 in 0 : vector<1x128xbf16>, vector<1x128xbf16> -> vector<2x128xbf16>
    %c0_37 = arith.constant 0 : index
    %c0_38 = arith.constant 0 : index
    %c0_39 = arith.constant 0 : index
    %c0_40 = arith.constant 0 : index
    %70 = vector.load %arg9[%c0_37, %c0_38, %c0_39, %c0_40] : memref<1x1x2x128xbf16, #tpu.memory_space<vmem>>, vector<1x1x2x128xbf16>
    %71 = vector.shape_cast %70 : vector<1x1x2x128xbf16> to vector<2x128xbf16>
    %72 = vector.shape_cast %69 : vector<2x128xbf16> to vector<1x1x2x128xbf16>
    tpu.vector_store %arg9[%c0_37, %c0_38, %c0_39, %c0_40], %72 {strides = array<i32>} : memref<1x1x2x128xbf16, #tpu.memory_space<vmem>>, vector<1x1x2x128xbf16>,
    %cst_41 = arith.constant dense<0.000000e+00> : vector<128xf32>
    %73 = vector.multi_reduction <add>, %62, %cst_41 [0] : vector<16x128xf32> to vector<128xf32>
    %74 = vector.shape_cast %73 : vector<128xf32> to vector<1x128xf32>
    %75 = arith.mulf %62, %62 : vector<16x128xf32>
    %cst_42 = arith.constant dense<0.000000e+00> : vector<128xf32>
    %76 = vector.multi_reduction <add>, %75, %cst_42 [0] : vector<16x128xf32> to vector<128xf32>
    %77 = vector.shape_cast %76 : vector<128xf32> to vector<1x128xf32>
    %78 = tpu.concatenate %74, %77 in 0 : vector<1x128xf32>, vector<1x128xf32> -> vector<2x128xf32>
    %c0_43 = arith.constant 0 : index
    %c0_44 = arith.constant 0 : index
    %c0_45 = arith.constant 0 : index
    %c0_46 = arith.constant 0 : index
    %79 = vector.load %arg10[%c0_43, %c0_44, %c0_45, %c0_46] : memref<1x1x2x128xf32, #tpu.memory_space<vmem>>, vector<1x1x2x128xf32>
    %80 = vector.shape_cast %79 : vector<1x1x2x128xf32> to vector<2x128xf32>
    %81 = vector.shape_cast %78 : vector<2x128xf32> to vector<1x1x2x128xf32>
    tpu.vector_store %arg10[%c0_43, %c0_44, %c0_45, %c0_46], %81 {strides = array<i32>} : memref<1x1x2x128xf32, #tpu.memory_space<vmem>>, vector<1x1x2x128xf32>,
    return
  }
  func.func @transform_0(%arg0: i32, %arg1: i32) -> (i32, i32, i32) {
    %c0_i32 = arith.constant 0 : i32
    %c0_i32_0 = arith.constant 0 : i32
    return %arg0, %arg1, %c0_i32 : i32, i32, i32
  }
  func.func @transform_1(%arg0: i32, %arg1: i32) -> (i32, i32, i32, i32) {
    %c0_i32 = arith.constant 0 : i32
    %c0_i32_0 = arith.constant 0 : i32
    %c0_i32_1 = arith.constant 0 : i32
    return %arg0, %arg1, %c0_i32, %c0_i32_0 : i32, i32, i32, i32
  }
  func.func @transform_2(%arg0: i32, %arg1: i32) -> (i32, i32, i32, i32) {
    %c0_i32 = arith.constant 0 : i32
    %c0_i32_0 = arith.constant 0 : i32
    %c0_i32_1 = arith.constant 0 : i32
    return %arg0, %arg1, %c0_i32, %c0_i32_0 : i32, i32, i32, i32
  }
  func.func @transform_3(%arg0: i32, %arg1: i32) -> (i32, i32) {
    %c0_i32 = arith.constant 0 : i32
    %c0_i32_0 = arith.constant 0 : i32
    %c0_i32_1 = arith.constant 0 : i32
    return %c0_i32, %c0_i32_0 : i32, i32
  }
  func.func @transform_4(%arg0: i32, %arg1: i32) -> (i32, i32) {
    %c0_i32 = arith.constant 0 : i32
    %c0_i32_0 = arith.constant 0 : i32
    %c0_i32_1 = arith.constant 0 : i32
    return %c0_i32, %c0_i32_0 : i32, i32
  }
  func.func @transform_5(%arg0: i32, %arg1: i32) -> (i32, i32) {
    %c0_i32 = arith.constant 0 : i32
    %c0_i32_0 = arith.constant 0 : i32
    %c0_i32_1 = arith.constant 0 : i32
    return %c0_i32, %c0_i32_0 : i32, i32
  }
  func.func @transform_6(%arg0: i32, %arg1: i32) -> (i32, i32, i32) {
    %c0_i32 = arith.constant 0 : i32
    %c0_i32_0 = arith.constant 0 : i32
    return %arg0, %arg1, %c0_i32 : i32, i32, i32
  }
  func.func @transform_7(%arg0: i32, %arg1: i32) -> (i32, i32, i32, i32) {
    %c0_i32 = arith.constant 0 : i32
    %c0_i32_0 = arith.constant 0 : i32
    %c0_i32_1 = arith.constant 0 : i32
    return %arg0, %arg1, %c0_i32, %c0_i32_0 : i32, i32, i32, i32
  }
  func.func @transform_8(%arg0: i32, %arg1: i32) -> (i32, i32, i32, i32) {
    %c0_i32 = arith.constant 0 : i32
    %c0_i32_0 = arith.constant 0 : i32
    %c0_i32_1 = arith.constant 0 : i32
    return %arg0, %arg1, %c0_i32, %c0_i32_0 : i32, i32, i32, i32
  }
}

module attributes {stable_mosaic.version = 11 : i64} {
  func.func @kernel(%arg0: i32, %arg1: i32, %arg2: memref<1x16x128xbf16, #tpu.memory_space<vmem>>, %arg3: memref<1x1x1x128xbf16, #tpu.memory_space<vmem>>, %arg4: memref<1x1x1x128xbf16, #tpu.memory_space<vmem>>, %arg5: memref<1x128xf32, #tpu.memory_space<vmem>>, %arg6: memref<1x128xf32, #tpu.memory_space<vmem>>, %arg7: memref<384x128xbf16, #tpu.memory_space<vmem>>, %arg8: memref<1x16x128xbf16, #tpu.memory_space<vmem>>, %arg9: memref<1x1x2x128xbf16, #tpu.memory_space<vmem>>, %arg10: memref<1x1x2x128xf32, #tpu.memory_space<vmem>>, %arg11: memref<16x384xbf16, #tpu.memory_space<vmem>>) attributes {dimension_semantics = [#tpu.dimension_semantics<parallel>, #tpu.dimension_semantics<parallel>], iteration_bounds = array<i64: 2, 1>, scalar_prefetch = 0 : i64, scratch_operands = 1 : i64, tpu.core_type = #tpu.core_type<tc>, window_params = [{transform_indices = @transform_0, window_bounds = array<i64: 1, 16, 128>}, {transform_indices = @transform_1, window_bounds = array<i64: 1, 1, 1, 128>}, {transform_indices = @transform_2, window_bounds = array<i64: 1, 1, 1, 128>}, {pipeline_mode = #tpu.pipeline_mode<synchronous>, transform_indices = @transform_3, window_bounds = array<i64: 1, 128>}, {pipeline_mode = #tpu.pipeline_mode<synchronous>, transform_indices = @transform_4, window_bounds = array<i64: 1, 128>}, {pipeline_mode = #tpu.pipeline_mode<synchronous>, transform_indices = @transform_5, window_bounds = array<i64: 384, 128>}, {transform_indices = @transform_6, window_bounds = array<i64: 1, 16, 128>}, {transform_indices = @transform_7, window_bounds = array<i64: 1, 1, 2, 128>}, {transform_indices = @transform_8, window_bounds = array<i64: 1, 1, 2, 128>}]} {
    %0 = tpu.iota {dimensions = array<i32: 0>} : vector<16x1xi32>
    %c0 = arith.constant 0 : index
    %c0_0 = arith.constant 0 : index
    %1 = vector.load %arg5[%c0, %c0_0] : memref<1x128xf32, #tpu.memory_space<vmem>>, vector<1x128xf32>
    %c0_1 = arith.constant 0 : index
    %c0_2 = arith.constant 0 : index
    %2 = vector.load %arg6[%c0_1, %c0_2] : memref<1x128xf32, #tpu.memory_space<vmem>>, vector<1x128xf32>
    %c0_3 = arith.constant 0 : index
    %c0_4 = arith.constant 0 : index
    %c0_5 = arith.constant 0 : index
    %3 = vector.load %arg2[%c0_3, %c0_4, %c0_5] : memref<1x16x128xbf16, #tpu.memory_space<vmem>>, vector<1x16x128xbf16>
    %4 = vector.shape_cast %3 : vector<1x16x128xbf16> to vector<16x128xbf16>
    %5 = arith.extf %4 : vector<16x128xbf16> to vector<16x128xf32>
    %6 = vector.broadcast %1 : vector<1x128xf32> to vector<16x128xf32>
    %7 = arith.mulf %5, %6 : vector<16x128xf32>
    %8 = vector.broadcast %2 : vector<1x128xf32> to vector<16x128xf32>
    %9 = arith.addf %7, %8 : vector<16x128xf32>
    %cst = arith.constant 0.000000e+00 : f32
    %10 = vector.broadcast %cst : f32 to vector<16x128xf32>
    %11 = arith.maximumf %9, %10 : vector<16x128xf32>
    %c0_6 = arith.constant 0 : index
    %c0_7 = arith.constant 0 : index
    %c0_8 = arith.constant 0 : index
    %c0_9 = arith.constant 0 : index
    %12 = vector.load %arg3[%c0_6, %c0_7, %c0_8, %c0_9] : memref<1x1x1x128xbf16, #tpu.memory_space<vmem>>, vector<1x1x1x128xbf16>
    %13 = vector.shape_cast %12 : vector<1x1x1x128xbf16> to vector<1x128xbf16>
    %14 = arith.extf %13 : vector<1x128xbf16> to vector<1x128xf32>
    %15 = arith.mulf %14, %1 : vector<1x128xf32>
    %16 = arith.addf %15, %2 : vector<1x128xf32>
    %cst_10 = arith.constant 0.000000e+00 : f32
    %17 = vector.broadcast %cst_10 : f32 to vector<1x128xf32>
    %18 = arith.maximumf %16, %17 : vector<1x128xf32>
    %c0_11 = arith.constant 0 : index
    %c0_12 = arith.constant 0 : index
    %c0_13 = arith.constant 0 : index
    %c0_14 = arith.constant 0 : index
    %19 = vector.load %arg4[%c0_11, %c0_12, %c0_13, %c0_14] : memref<1x1x1x128xbf16, #tpu.memory_space<vmem>>, vector<1x1x1x128xbf16>
    %20 = vector.shape_cast %19 : vector<1x1x1x128xbf16> to vector<1x128xbf16>
    %21 = arith.extf %20 : vector<1x128xbf16> to vector<1x128xf32>
    %22 = arith.mulf %21, %1 : vector<1x128xf32>
    %23 = arith.addf %22, %2 : vector<1x128xf32>
    %cst_15 = arith.constant 0.000000e+00 : f32
    %24 = vector.broadcast %cst_15 : f32 to vector<1x128xf32>
    %25 = arith.maximumf %23, %24 : vector<1x128xf32>
    %c0_i32 = arith.constant 0 : i32
    %26 = arith.cmpi sgt, %arg1, %c0_i32 : i32
    %cst_16 = arith.constant 0.000000e+00 : f32
    %27 = vector.broadcast %cst_16 : f32 to vector<1x128xf32>
    %28 = arith.select %26, %18, %27 : vector<1x128xf32>
    %c1_i32 = arith.constant 1 : i32
    %29 = arith.addi %arg1, %c1_i32 : i32
    %c16_i32 = arith.constant 16 : i32
    %30 = arith.muli %29, %c16_i32 : i32
    %c16_i32_17 = arith.constant 16 : i32
    %31 = arith.cmpi slt, %30, %c16_i32_17 : i32
    %cst_18 = arith.constant 0.000000e+00 : f32
    %32 = vector.broadcast %cst_18 : f32 to vector<1x128xf32>
    %33 = arith.select %31, %25, %32 : vector<1x128xf32>
    %c1_i32_19 = arith.constant 1 : i32
    %34 = tpu.dynamic_rotate %11 by %c1_i32_19 dim 0 : vector<16x128xf32>, i32 -> vector<16x128xf32>
    %c0_i32_20 = arith.constant 0 : i32
    %35 = vector.broadcast %c0_i32_20 : i32 to vector<16x1xi32>
    %36 = arith.cmpi eq, %0, %35 : vector<16x1xi32>
    %37 = vector.shape_cast %36 : vector<16x1xi1> to vector<16x1xi1>
    %38 = vector.broadcast %37 : vector<16x1xi1> to vector<16x128xi1>
    %39 = vector.shape_cast %28 : vector<1x128xf32> to vector<1x128xf32>
    %40 = vector.broadcast %39 : vector<1x128xf32> to vector<16x128xf32>
    %41 = arith.select %38, %40, %34 : vector<16x128xi1>, vector<16x128xf32>
    %c15_i32 = arith.constant 15 : i32
    %42 = tpu.dynamic_rotate %11 by %c15_i32 dim 0 : vector<16x128xf32>, i32 -> vector<16x128xf32>
    %c15_i32_21 = arith.constant 15 : i32
    %43 = vector.broadcast %c15_i32_21 : i32 to vector<16x1xi32>
    %44 = arith.cmpi eq, %0, %43 : vector<16x1xi32>
    %45 = vector.shape_cast %44 : vector<16x1xi1> to vector<16x1xi1>
    %46 = vector.broadcast %45 : vector<16x1xi1> to vector<16x128xi1>
    %47 = vector.shape_cast %33 : vector<1x128xf32> to vector<1x128xf32>
    %48 = vector.broadcast %47 : vector<1x128xf32> to vector<16x128xf32>
    %49 = arith.select %46, %48, %42 : vector<16x128xi1>, vector<16x128xf32>
    %50 = arith.truncf %41 : vector<16x128xf32> to vector<16x128xbf16>
    %c0_22 = arith.constant 0 : index
    %c0_23 = arith.constant 0 : index
    %51 = vector.load %arg11[%c0_22, %c0_23] : memref<16x384xbf16, #tpu.memory_space<vmem>>, vector<16x128xbf16>
    tpu.vector_store %arg11[%c0_22, %c0_23], %50 {strides = array<i32>} : memref<16x384xbf16, #tpu.memory_space<vmem>>, vector<16x128xbf16>,
    %52 = arith.truncf %11 : vector<16x128xf32> to vector<16x128xbf16>
    %c0_24 = arith.constant 0 : index
    %c128 = arith.constant 128 : index
    %53 = vector.load %arg11[%c0_24, %c128] : memref<16x384xbf16, #tpu.memory_space<vmem>>, vector<16x128xbf16>
    tpu.vector_store %arg11[%c0_24, %c128], %52 {strides = array<i32>} : memref<16x384xbf16, #tpu.memory_space<vmem>>, vector<16x128xbf16>,
    %54 = arith.truncf %49 : vector<16x128xf32> to vector<16x128xbf16>
    %c0_25 = arith.constant 0 : index
    %c256 = arith.constant 256 : index
    %55 = vector.load %arg11[%c0_25, %c256] : memref<16x384xbf16, #tpu.memory_space<vmem>>, vector<16x128xbf16>
    tpu.vector_store %arg11[%c0_25, %c256], %54 {strides = array<i32>} : memref<16x384xbf16, #tpu.memory_space<vmem>>, vector<16x128xbf16>,
    %c0_26 = arith.constant 0 : index
    %c0_27 = arith.constant 0 : index
    %56 = vector.load %arg11[%c0_26, %c0_27] : memref<16x384xbf16, #tpu.memory_space<vmem>>, vector<16x384xbf16>
    %c0_28 = arith.constant 0 : index
    %c0_29 = arith.constant 0 : index
    %57 = vector.load %arg7[%c0_28, %c0_29] : memref<384x128xbf16, #tpu.memory_space<vmem>>, vector<384x128xbf16>
    %cst_30 = arith.constant dense<0.000000e+00> : vector<16x128xf32>
    %58 = tpu.matmul %56, %57, %cst_30 {dimension_numbers = #tpu.dot_dimension_numbers<[1], [0], [0], [1], [0, 0, 1, 1], [], []>} : vector<16x384xbf16>, vector<384x128xbf16>, vector<16x128xf32> -> vector<16x128xf32>
    %c0_31 = arith.constant 0 : index
    %c0_32 = arith.constant 0 : index
    %c0_33 = arith.constant 0 : index
    %59 = vector.load %arg2[%c0_31, %c0_32, %c0_33] : memref<1x16x128xbf16, #tpu.memory_space<vmem>>, vector<1x16x128xbf16>
    %60 = vector.shape_cast %59 : vector<1x16x128xbf16> to vector<16x128xbf16>
    %61 = arith.extf %60 : vector<16x128xbf16> to vector<16x128xf32>
    %62 = arith.addf %58, %61 : vector<16x128xf32>
    %63 = arith.truncf %62 : vector<16x128xf32> to vector<16x128xbf16>
    %c0_34 = arith.constant 0 : index
    %c0_35 = arith.constant 0 : index
    %c0_36 = arith.constant 0 : index
    %64 = vector.load %arg8[%c0_34, %c0_35, %c0_36] : memref<1x16x128xbf16, #tpu.memory_space<vmem>>, vector<1x16x128xbf16>
    %65 = vector.shape_cast %64 : vector<1x16x128xbf16> to vector<16x128xbf16>
    %66 = vector.shape_cast %63 : vector<16x128xbf16> to vector<1x16x128xbf16>
    tpu.vector_store %arg8[%c0_34, %c0_35, %c0_36], %66 {strides = array<i32>} : memref<1x16x128xbf16, #tpu.memory_space<vmem>>, vector<1x16x128xbf16>,
    %67 = vector.extract_strided_slice %63 {offsets = [0, 0], sizes = [1, 128], strides = [1, 1]} : vector<16x128xbf16> to vector<1x128xbf16>
    %68 = vector.extract_strided_slice %63 {offsets = [15, 0], sizes = [1, 128], strides = [1, 1]} : vector<16x128xbf16> to vector<1x128xbf16>
    %69 = tpu.concatenate %67, %68 in 0 : vector<1x128xbf16>, vector<1x128xbf16> -> vector<2x128xbf16>
    %c0_37 = arith.constant 0 : index
    %c0_38 = arith.constant 0 : index
    %c0_39 = arith.constant 0 : index
    %c0_40 = arith.constant 0 : index
    %70 = vector.load %arg9[%c0_37, %c0_38, %c0_39, %c0_40] : memref<1x1x2x128xbf16, #tpu.memory_space<vmem>>, vector<1x1x2x128xbf16>
    %71 = vector.shape_cast %70 : vector<1x1x2x128xbf16> to vector<2x128xbf16>
    %72 = vector.shape_cast %69 : vector<2x128xbf16> to vector<1x1x2x128xbf16>
    tpu.vector_store %arg9[%c0_37, %c0_38, %c0_39, %c0_40], %72 {strides = array<i32>} : memref<1x1x2x128xbf16, #tpu.memory_space<vmem>>, vector<1x1x2x128xbf16>,
    %cst_41 = arith.constant dense<0.000000e+00> : vector<128xf32>
    %73 = vector.multi_reduction <add>, %62, %cst_41 [0] : vector<16x128xf32> to vector<128xf32>
    %74 = vector.shape_cast %73 : vector<128xf32> to vector<1x128xf32>
    %75 = arith.mulf %62, %62 : vector<16x128xf32>
    %cst_42 = arith.constant dense<0.000000e+00> : vector<128xf32>
    %76 = vector.multi_reduction <add>, %75, %cst_42 [0] : vector<16x128xf32> to vector<128xf32>
    %77 = vector.shape_cast %76 : vector<128xf32> to vector<1x128xf32>
    %78 = tpu.concatenate %74, %77 in 0 : vector<1x128xf32>, vector<1x128xf32> -> vector<2x128xf32>
    %c0_43 = arith.constant 0 : index
    %c0_44 = arith.constant 0 : index
    %c0_45 = arith.constant 0 : index
    %c0_46 = arith.constant 0 : index
    %79 = vector.load %arg10[%c0_43, %c0_44, %c0_45, %c0_46] : memref<1x1x2x128xf32, #tpu.memory_space<vmem>>, vector<1x1x2x128xf32>
    %80 = vector.shape_cast %79 : vector<1x1x2x128xf32> to vector<2x128xf32>
    %81 = vector.shape_cast %78 : vector<2x128xf32> to vector<1x1x2x128xf32>
    tpu.vector_store %arg10[%c0_43, %c0_44, %c0_45, %c0_46], %81 {strides = array<i32>} : memref<1x1x2x128xf32, #tpu.memory_space<vmem>>, vector<1x1x2x128xf32>,
    return
  }
  func.func @transform_0(%arg0: i32, %arg1: i32) -> (i32, i32, i32) {
    %c0_i32 = arith.constant 0 : i32
    %c0_i32_0 = arith.constant 0 : i32
    return %arg0, %arg1, %c0_i32 : i32, i32, i32
  }
  func.func @transform_1(%arg0: i32, %arg1: i32) -> (i32, i32, i32, i32) {
    %c0_i32 = arith.constant 0 : i32
    %c0_i32_0 = arith.constant 0 : i32
    %c0_i32_1 = arith.constant 0 : i32
    return %arg0, %arg1, %c0_i32, %c0_i32_0 : i32, i32, i32, i32
  }
  func.func @transform_2(%arg0: i32, %arg1: i32) -> (i32, i32, i32, i32) {
    %c0_i32 = arith.constant 0 : i32
    %c0_i32_0 = arith.constant 0 : i32
    %c0_i32_1 = arith.constant 0 : i32
    return %arg0, %arg1, %c0_i32, %c0_i32_0 : i32, i32, i32, i32
  }
  func.func @transform_3(%arg0: i32, %arg1: i32) -> (i32, i32) {
    %c0_i32 = arith.constant 0 : i32
    %c0_i32_0 = arith.constant 0 : i32
    %c0_i32_1 = arith.constant 0 : i32
    return %c0_i32, %c0_i32_0 : i32, i32
  }
  func.func @transform_4(%arg0: i32, %arg1: i32) -> (i32, i32) {
    %c0_i32 = arith.constant 0 : i32
    %c0_i32_0 = arith.constant 0 : i32
    %c0_i32_1 = arith.constant 0 : i32
    return %c0_i32, %c0_i32_0 : i32, i32
  }
  func.func @transform_5(%arg0: i32, %arg1: i32) -> (i32, i32) {
    %c0_i32 = arith.constant 0 : i32
    %c0_i32_0 = arith.constant 0 : i32
    %c0_i32_1 = arith.constant 0 : i32
    return %c0_i32, %c0_i32_0 : i32, i32
  }
  func.func @transform_6(%arg0: i32, %arg1: i32) -> (i32, i32, i32) {
    %c0_i32 = arith.constant 0 : i32
    %c0_i32_0 = arith.constant 0 : i32
    return %arg0, %arg1, %c0_i32 : i32, i32, i32
  }
  func.func @transform_7(%arg0: i32, %arg1: i32) -> (i32, i32, i32, i32) {
    %c0_i32 = arith.constant 0 : i32
    %c0_i32_0 = arith.constant 0 : i32
    %c0_i32_1 = arith.constant 0 : i32
    return %arg0, %arg1, %c0_i32, %c0_i32_0 : i32, i32, i32, i32
  }
  func.func @transform_8(%arg0: i32, %arg1: i32) -> (i32, i32, i32, i32) {
    %c0_i32 = arith.constant 0 : i32
    %c0_i32_0 = arith.constant 0 : i32
    %c0_i32_1 = arith.constant 0 : i32
    return %arg0, %arg1, %c0_i32, %c0_i32_0 : i32, i32, i32, i32
  }
}

</mosaic_0001>

<bundles_post_ra>
// kernel: dense_block1d_forward.3
= control target key start
LH: loop header
LB: loop body
LE: loop exit
PB: predicated region body
PF: predicated region fallthrough
CT: control target
= control target key end

     0   :  { %14 = vsyncpa [#allocation4], 0  ;;  %s1563_s0 = inlined_call_operand.vmem [shape: bf16[2,16,128], index: 0, kind: input, shape index: {}, may-alias: {0,6}]   ;;  %s1564_s1 = inlined_call_operand.vmem [shape: bf16[2,1,1,128], index: 1, kind: input, shape index: {}, may-alias: {1,2}]   ;;  %s1565_s2 = inlined_call_operand.vmem [shape: bf16[2,1,1,128], index: 2, kind: input, shape index: {}, may-alias: {1,2}]   ;;  %s1566_s3 = inlined_call_operand.vmem [shape: f32[1,128], index: 3, kind: input, shape index: {}]   ;;  %s1567_s4 = inlined_call_operand.vmem [shape: f32[1,128], index: 4, kind: input, shape index: {}]   ;;  %s1568_s5 = inlined_call_operand.vmem [shape: bf16[384,128], index: 5, kind: input, shape index: {}]   ;;  %s1569_s6 = inlined_call_operand.vmem [shape: bf16[2,16,128], index: 6, kind: output, shape index: {0}, may-alias: {0,6}]   ;;  %s1570_s7 = inlined_call_operand.hbm [shape: bf16[2,1,2,128], index: 7, kind: output, shape index: {1}]   ;;  %s1571_s8 = inlined_call_operand.vmem [shape: f32[2,1,2,128], index: 8, kind: output, shape index: {2}]  }
   0x1   :  { %16 = vsyncpa [#allocation4 + $0x1], 0  ;;  %s1355_s2 = smov 0   ;;  %s1357_s26 = smov 0  }
   0x2   :  { %s1359_s27 = smov 0   ;;  %s1361_s28 = smov 0  }
   0x3   :  { %s1363_s29 = smov 0   ;;  %s1365_s30 = smov 0  }
   0x4 LB: > { %s998_s9 = sadd.s32 4294967295, %s1307_s30   ;;  %s999_s10 = sadd.s32 4294967294, %s1307_s30   ;;  %s1307_s30 = sphi %s1365_s30, %s22_s30   ;;  %s1303_s29 = sphi %s1363_s29, %s1578_s29   ;;  %s1299_s28 = sphi %s1361_s28, %s1577_s28   ;;  %s1295_s27 = sphi %s1359_s27, %s1576_s27   ;;  %s1291_s26 = sphi %s1357_s26, %s1575_s26   ;;  %s1287_s2 = sphi %s1355_s2, %s1574_s2  }
   0x5   : > { %s34_s11 = sadd.s32 1, %s1303_s29  ;;  %s218_s12 = sadd.s32 1, %s1295_s27 }
   0x6   : > { %p36_p0 = scmp.ge.s32.totalorder %s34_s11, 2  ;;  %p228_p1 = scmp.ne.s32.totalorder %s1295_s27, %s1291_s26 }
   0x7   : > { %p229_p2 = scmp.eq.s32.totalorder %s998_s9, 1  ;;  %p234_p3 = scmp.ne.s32.totalorder %s1291_s26, %s1287_s2 }
   0x8   : > { %s1580_s11 = smov (%p36_p0, %s34_s11), 0  ;;  %p235_p5 = scmp.eq.s32.totalorder %s999_s10, 1 }
   0x9   : > { %p1395_p4 = por %p229_p2, %p228_p1  ;;  %s213_s14 = ssub.s32 %s1303_s29, %s1580_s11 }
   0xa   : > { %p1002_p6 = scmp.ge.s32.totalorder %s1307_s30, 1  ;;  %p216_p7 = scmp.eq.s32.totalorder %s213_s14, 0 }
   0xb   : > { %p1402_p8 = por %p235_p5, %p234_p3  ;;  %p321_p9 = scmp.lt.s32.totalorder %s1307_s30, 3 }
   0xc   : > { %s1408_s16 = scalar_select %p216_p7, %s1295_s27, %s218_s12  }
   0xd   : > { %p322_p10 = pnand %p1002_p6, %p321_p9 }
   0xe   : > { %p387_p11 = scmp.lt.s32.totalorder (!%p322_p10), %s1299_s28, 1  ;;  %s375_s10 = sand.u32 (!%p322_p10), 1, %s1291_s26  }
   0xf   : > { %325 = sbr.rel (%p322_p10) target bundleno = 214 (0xd6), region = 44  ;;  %s829_s18 = scalar_lea.hbm (!%p322_p10), %s1570_s7, %s1299_s28 }
  0x10   : > { %s376_s20 = scalar_lea.vmem (!%p322_p10), [#allocation3], %s375_s10  ;;  %s1249_s25 = scalar_lea.hbm (!%p322_p10), %s1570_s7, 2 }
  0x14   : > { %v1130_v0 = vld [vmem:[%s1568_s5 + $0x38] sm:$0xff]  ;;  %v1129_v3 = vld [vmem:[%s1568_s5 + $0x30] sm:$0xff]  ;;  %s1427_s9 = scalar_select %p387_p11, %s1299_s28, 1  ;;  %v425_v6 = vlaneseq  ;;  %v1128_v7 = vld [vmem:[%s1568_s5 + $0x28] sm:$0xff]  ;;  %v1309_v29 = vmov 0.0   ;;  %vm775_vm4 = vcmask 1040384  }
  0x15   : > { %v1138_v1 = vld [vmem:[%s1568_s5 + $0x78] sm:$0xff]  ;;  %724 = vmatpush.bf16.msra.mxu0 %v1130_v0  ;;  %v1137_v4 = vld [vmem:[%s1568_s5 + $0x70] sm:$0xff]  ;;  %v1136_v8 = vld [vmem:[%s1568_s5 + $0x68] sm:$0xff]  ;;  %v479_v30 = vperm.slane %v1309_v29, 0  ;;  %vm776_vm5 = vsmask.f32 256 }
  0x16   : > { %v1146_v2 = vld [vmem:[%s1568_s5 + $0xb8] sm:$0xff]  ;;  %738 = vmatpush.bf16.msra.mxu1 %v1138_v1  ;;  %v1145_v5 = vld [vmem:[%s1568_s5 + $0xb0] sm:$0xff]  ;;  %s1118_s14 = sshll.u32 %s1427_s9, 3  ;;  %v1144_v9 = vld [vmem:[%s1568_s5 + $0xa8] sm:$0xff]  ;;  %v426_v10 = vshrl.u32 %v425_v6, 7  ;;  %s809_s28 = scalar_lea.sflag [#allocation4], %s375_s10 }
  0x17   : > { %752 = vmatpush.bf16.msra.mxu2 %v1146_v2  ;;  %s394_s19 = scalar_lea.vmem %s1563_s0, %s1118_s14  ;;  %v1227_v14 = vld [vmem:[%s1566_s3] ss:$0 sm:$0xff]  ;;  %v1126_v24 = vld [vmem:[%s1568_s5 + $0x18] sm:$0xff]  ;;  %v1125_v35 = vld [vmem:[%s1568_s5 + $0x10] sm:$0xff]  ;;  %s416_s1 = scalar_lea.vmem %s1569_s6, %s1118_s14 }
  0x18   : > { %v1447_v11 = vld [vmem:[%s394_s19] sm:$0xff]   ;;  %v427_v21 = vadd.s32 8, %v426_v10  ;;  %v1134_v25 = vld [vmem:[%s1568_s5 + $0x58] sm:$0xff]  ;;  %vm470_vm0 = vcmp.lt.s32.totalorder %v426_v10, 1  ;;  %vm473_vm1 = vcmp.eq.s32.totalorder %v426_v10, 0  ;;  %vm484_vm2 = vcmp.lt.s32.totalorder %v426_v10, 7  ;;  %vm777_vm6 = vmand %vm775_vm4, %vm776_vm5 }
  0x19   : > { %725 = vmatpush.bf16.msra.mxu0 %v1129_v3  ;;  %v1149_v12 = vunpack.c.l.bf16 %v1447_v11  ;;  %v1150_v13 = vunpack.c.h.bf16 %v1447_v11  ;;  %v1228_v15 = vld [vmem:[%s1567_s4] ss:$0 sm:$0xff]  ;;  %v1142_v26 = vld [vmem:[%s1568_s5 + $0x98] sm:$0xff]  ;;  %v1133_v36 = vld [vmem:[%s1568_s5 + $0x50] sm:$0xff]  ;;  %s831_s14 = sshll.u32 %s376_s20, 4  ;;  %s1522_s19 = sshll.u32 %s829_s18, 4  ;;  %s832_s14 = int_to_ptr.vmem [resolvable:$true] %s831_s14  ;;  %s834_s19 = int_to_ptr.hbm [resolvable:$true] %s1522_s19 }
  0x1a   : > { %739 = vmatpush.bf16.msra.mxu1 %v1137_v4  ;;  %v1127_v16 = vld [vmem:[%s1568_s5 + $0x20] sm:$0xff]  ;;  %vm488_vm3 = vcmp.eq.s32.totalorder %v427_v21, 15  ;;  %v1141_v37 = vld [vmem:[%s1568_s5 + $0x90] sm:$0xff]  ;;  %v1124_v48 = vld [vmem:[%s1568_s5 + $0x8] sm:$0xff]  ;;  %s1243_s21 = sshra.s32 %s834_s19, 4  ;;  %s1244_s21 = int_to_ptr.hbm [resolvable:$true] %s1243_s21 }
  0x1b   : > { %753 = vmatpush.bf16.msra.mxu2 %v1145_v5  ;;  %v1135_v17 = vld [vmem:[%s1568_s5 + $0x60] sm:$0xff]  ;;  %v437_v19 = vmul.f32 %v1227_v14, %v1149_v12  ;;  %v438_v20 = vmul.f32 %v1227_v14, %v1150_v13  ;;  %v1132_v49 = vld [vmem:[%s1568_s5 + $0x48] sm:$0xff]  ;;  %s1245_s22 = scalar_lea.hbm %s1244_s21, 1  ;;  %p1250_p1 = scmp.lt.s32.totalorder %s1244_s21, %s1570_s7 }
  0x1c   : > { %v1143_v18 = vld [vmem:[%s1568_s5 + $0xa0] sm:$0xff]  ;;  %v1140_v50 = vld [vmem:[%s1568_s5 + $0x88] sm:$0xff]  ;;  %p1246_p12 = scmp.ne.s32.totalorder %s1244_s21, %s1245_s22  ;;  %p1251_p2 = scmp.lt.s32.totalorder %s1249_s25, %s1245_s22 }
  0x1d   : > { %726 = vmatpush.bf16.msra.mxu0 %v1128_v7  ;;  %v442_v22 = vadd.f32 %v1228_v15, %v437_v19  ;;  %v443_v23 = vadd.f32 %v1228_v15, %v438_v20  ;;  %v1123_v51 = vld [vmem:[%s1568_s5] sm:$0xff] }
  0x1e   : > { %740 = vmatpush.bf16.msra.mxu1 %v1136_v8  ;;  %v1131_v52 = vld [vmem:[%s1568_s5 + $0x40] sm:$0xff]  ;;  %p1247_p13 = pnand %p1246_p12, %p1395_p4  ;;  %p1252_p3 = por %p1251_p2, %p1250_p1 }
  0x1f   : > { %754 = vmatpush.bf16.msra.mxu2 %v1144_v9  ;;  %v444_v27 = vmax.f32 %v442_v22, 0.0  ;;  %v445_v28 = vmax.f32 %v443_v23, 0.0  ;;  %v1139_v53 = vld [vmem:[%s1568_s5 + $0x80] sm:$0xff] }
  0x20   : > { %p1248_p0 = pneg %p1247_p13 }
  0x21   : > { %727 = vmatpush.bf16.msra.mxu0 %v1127_v16  ;;  %v468_v31 = vrot.slane %v444_v27, 7  ;;  %v469_v32 = vrot.slane %v445_v28, 7  ;;  %v482_v33 = vrot.slane %v444_v27, 1  ;;  %v483_v34 = vrot.slane %v445_v28, 1 }
  0x22   : > { %741 = vmatpush.bf16.msra.mxu1 %v1135_v17  ;;  %p1253_p5 = pnand %p1252_p3, %p1248_p0 }
  0x23   : > { %755 = vmatpush.bf16.msra.mxu2 %v1143_v18  ;;  %v471_v38 = vsel %vm470_vm0, %v468_v31, %v469_v32  ;;  %v472_v39 = vsel %vm470_vm0, %v469_v32, %v468_v31  ;;  %v486_v40 = vsel %vm484_vm2, %v483_v34, %v482_v33  ;;  %v485_v41 = vsel %vm484_vm2, %v482_v33, %v483_v34 }
  0x24   : > { %v480_v42 = vsel %vm473_vm1, %v479_v30, %v472_v39  ;;  %v497_v43 = vpack.c.bf16 %v471_v38, %v471_v38  ;;  %v495_v44 = vsel %vm488_vm3, %v479_v30, %v486_v40  ;;  %v504_v47 = vpack.c.bf16 %v485_v41, %v485_v41 }
  0x25   : > { %728 = vmatpush.bf16.msra.mxu0 %v1126_v24  ;;  %v1154_v45 = vpack.c.bf16 %v444_v27, %v480_v42  ;;  %v1159_v46 = vpack.c.bf16 %v495_v44, %v445_v28 }
  0x26   : > { %742 = vmatpush.bf16.msra.mxu1 %v1134_v25  ;;  %499 = vst [vmem:[#allocation2 + $0xc] sm:$0xf] %v497_v43 }
  0x27   : > { %756 = vmatpush.bf16.msra.mxu2 %v1142_v26  ;;  %1155 = vst [vmem:[#allocation2] sm:$0xff] %v1154_v45  }
  0x28   : > { %1170 = vst [vmem:[#allocation2 + $0x10] sm:$0xff] %v1159_v46  }
  0x29   : > { %729 = vmatpush.bf16.msra.mxu0 %v1125_v35  ;;  %506 = vst [vmem:[#allocation2 + $0x8] sm:$0xf] %v504_v47 }
  0x2a   : > { %743 = vmatpush.bf16.msra.mxu1 %v1133_v36 }
  0x2b   : > { %757 = vmatpush.bf16.msra.mxu2 %v1141_v37 }
  0x2d   : > { %730 = vmatpush.bf16.msra.mxu0 %v1124_v48  ;;  %v1121_v54 = vld [vmem:[#allocation2 + $0x8] sm:$0xf0] }
  0x2e   : > { %744 = vmatpush.bf16.msra.mxu1 %v1132_v49  ;;  %v1010_v55 = vld [vmem:[#allocation2] sm:$0xf]  ;;  %v1120_v56 = vld [vmem:[#allocation2 + $0x4] sm:$0xf] }
  0x2f   : > { %758 = vmatpush.bf16.msra.mxu2 %v1140_v50  ;;  %v1011_v57 = vor.u32 %v1121_v54, %v1010_v55  ;;  %v1012_v58 = vld [vmem:[#allocation2 + $0xc] sm:$0xf0]  ;;  %v1122_v59 = vld [vmem:[#allocation2 + $0x10] sm:$0xf0] }
  0x30   : > { %v1015_v60 = vor.u32 %v1120_v56, %v1012_v58  ;;  %v1018_v61 = vld [vmem:[#allocation2 + $0x8] sm:$0xf] }
  0x31   : > { %731 = vmatpush.bf16.msra.mxu0 %v1123_v51  ;;  %v1019_v62 = vor.u32 %v1122_v59, %v1018_v61 }
  0x32   : > { %745 = vmatpush.bf16.msra.mxu1 %v1131_v52 }
  0x33   : > { %759 = vmatpush.bf16.msra.mxu2 %v1139_v53 }
  0x34   : > { %732 = vmatmul.bf16.vlgmr.msra.gmra.mxu0 %v1011_v57 }
  0x35   : > { %746 = vmatmul.bf16.vlgmr.msra.gmra.mxu1 %v1015_v60 }
  0x36   : > { %760 = vmatmul.bf16.vlgmr.msra.gmra.mxu2 %v1019_v62 }
  0xb1   : > { %v733_v63 = vpop.f32.mrf.mxu0 }
  0xb2   : > { %v747_v0 = vpop.f32.mrf.mxu1  ;;  %v734_v1 = vadd.f32 %v1149_v12, %v733_v63 }
  0xb4   : > { %v748_v4 = vadd.f32 %v747_v0, %v734_v1 }
  0xb9   : > { %v761_v2 = vpop.f32.mrf.mxu2  ;;  %v735_v3 = vpop.f32.mrf.mxu0 }
  0xba   : > { %v736_v5 = vadd.f32 %v1150_v13, %v735_v3  ;;  %v762_v6 = vadd.f32 %v761_v2, %v748_v4  ;;  %v749_v7 = vpop.f32.mrf.mxu1 }
  0xbc   : > { %v750_v8 = vadd.f32 %v749_v7, %v736_v5  ;;  %v787_v14 = vmul.f32 %v762_v6, %v762_v6  ;;  %v766_v22 = vpack.c.bf16 %v762_v6, %v762_v6 }
  0xc1   : > { %v763_v9 = vpop.f32.mrf.mxu2 }
  0xc2   : > { %v764_v10 = vadd.f32 %v763_v9, %v750_v8 }
  0xc4   : > { %v767_v12 = vpack.c.bf16 %v764_v10, %v764_v10  ;;  %v1168_v15 = vpack.c.bf16 %v764_v10, %v762_v6  ;;  %v780_v16 = vadd.f32 %v764_v10, %v762_v6  ;;  %v788_v17 = vmul.f32 %v764_v10, %v764_v10 }
  0xc6   : > { %1169 = vst [vmem:[%s416_s1] sm:$0xff] %v1168_v15   ;;  %v771_v11 = vunpack.c.l.b16 %v767_v12  ;;  %v781_v13 = vrot.slane %v780_v16, 4  ;;  %v789_v18 = vadd.f32 %v788_v17, %v787_v14 }
  0xc8   : > { %v782_v19 = vadd.f32 %v781_v13, %v780_v16  ;;  %v790_v20 = vrot.slane %v789_v18, 4  ;;  %v772_v21 = vpack.c.b16 %v771_v11, %v771_v11 }
  0xca   : > { %v783_v23 = vrot.slane %v782_v19, 2  ;;  %v791_v24 = vadd.f32 %v790_v20, %v789_v18  ;;  %v773_v25 = vrot.slane %v772_v21, 3 }
  0xcc   : > { %v784_v26 = vadd.f32 %v783_v23, %v782_v19  ;;  %v792_v27 = vrot.slane %v791_v24, 2  ;;  %v778_v28 = vsel %vm777_vm6, %v766_v22, %v773_v25 }
  0xcd   : > { %779 = vst [vmem:[%s376_s20] sm:$0x1] %v778_v28 }
  0xce   : > { %v785_v29 = vrot.slane %v784_v26, 1  ;;  %v793_v30 = vadd.f32 %v792_v27, %v791_v24 }
  0xcf   : > { %1256 = shalt.err (!%p1253_p5)
}
  0xd0   : > { %1171 = dma.vmem_to_hbm [thread:$0]  (%p1395_p4), %s832_s14, 16, %s834_s19, %s809_s28   ;;  %v794_v31 = vrot.slane %v793_v30, 1  ;;  %v786_v32 = vadd.f32 %v785_v29, %v784_v26 }
  0xd1   : > { %s1007_s10 = sshll.u32 %s1427_s9, 1 }
  0xd2   : > { %s424_s20 = scalar_lea.vmem %s1571_s8, %s1007_s10  ;;  %v795_v33 = vadd.f32 %v794_v31, %v793_v30 }
  0xd4   : > { %v797_v34 = vsel %vm775_vm4, %v786_v32, %v795_v33 }
  0xd5   : > { %798 = vst [vmem:[%s424_s20] sm:$0x3] %v797_v34 }
  0xd6 PF: > { %p1177_p6 = scmp.ge.s32.totalorder %s1307_s30, 2  ;;  %s860_s21 = sand.u32 1, %s1287_s2  }
  0xd7   : > { %s861_s13 = scalar_lea.sflag [#allocation4], %s860_s21 }
  0xd8   : > { %p1174_p7 = pnand %p1177_p6, %p1402_p8 }
  0xda   : > { %p1175_p4 = pneg %p1174_p7 }
  0xdc   : > { %1282 = dma.done.wait (%p1175_p4), %s861_s13, 16  }
  0xdd   : > { %1284 = vsyncadd (%p1175_p4), %s861_s13, 4294967280  ;;  %s22_s30 = sadd.s32 1, %s1307_s30   ;;  %s1574_s2 = smov %s1291_s26 }
  0xde   : > { %p19_p9 = scmp.ge.s32.totalorder %s22_s30, 4   ;;  %s1575_s26 = smov %s1295_s27 }
  0xdf   : > { %s1576_s27 = smov %s1408_s16  ;;  %s1577_s28 = smov %s1303_s29 }
  0xe0   : > { %s1578_s29 = smov %s1580_s11  ;;  %21 = sbr.rel (!%p19_p9) target bundleno = 4 (0x4), region = 109 }
  0xe5   :  { %876 = vsyncpa [#allocation4], 1 }
  0xe6   :  { %878 = vsyncpa [#allocation4 + $0x1], 1 }

// kernel: dense_block1d_forward.5
= control target key start
LH: loop header
LB: loop body
LE: loop exit
PB: predicated region body
PF: predicated region fallthrough
CT: control target
= control target key end

     0   :  { %s1628_s0 = inlined_call_operand.vmem [shape: bf16[2,16,128], index: 0, kind: input, shape index: {}, may-alias: {0,6}]   ;;  %s1629_s1 = inlined_call_operand.vmem [shape: bf16[2,1,1,128], index: 1, kind: input, shape index: {}, may-alias: {1,2}]   ;;  %s1630_s2 = inlined_call_operand.vmem [shape: bf16[2,1,1,128], index: 2, kind: input, shape index: {}, may-alias: {1,2}]   ;;  %s1631_s3 = inlined_call_operand.vmem [shape: f32[1,128], index: 3, kind: input, shape index: {}]   ;;  %s1632_s4 = inlined_call_operand.vmem [shape: f32[1,128], index: 4, kind: input, shape index: {}]   ;;  %s1633_s5 = inlined_call_operand.vmem [shape: bf16[384,128], index: 5, kind: input, shape index: {}]   ;;  %s1634_s6 = inlined_call_operand.vmem [shape: bf16[2,16,128], index: 6, kind: output, shape index: {0}, may-alias: {0,6}]   ;;  %s1635_s7 = inlined_call_operand.hbm [shape: bf16[2,1,2,128], index: 7, kind: output, shape index: {1}]   ;;  %s1636_s8 = inlined_call_operand.hbm [shape: f32[2,1,2,128], index: 8, kind: output, shape index: {2}]  }
   0x1   :  { %1637 = sst [smem:[#allocation9_spill]] %s1628_s0 }
   0x2   :  { %1638 = sst [smem:[#allocation10_spill]] %s1631_s3 }
   0x3   :  { %14 = vsyncpa [#allocation4], 0 }
   0x4   :  { %16 = vsyncpa [#allocation4 + $0x1], 0 }
   0x5   :  { %17 = vsyncpa [#allocation6], 0 }
   0x6   :  { %19 = vsyncpa [#allocation6 + $0x1], 0  ;;  %s1401_s2 = smov 0   ;;  %s1403_s26 = smov 0  }
   0x7   :  { %s1405_s27 = smov 0   ;;  %s1407_s28 = smov 0  }
   0x8   :  { %s1409_s29 = smov 0   ;;  %s1411_s30 = smov 0  }
   0x9 LB: > { %s1005_s9 = sadd.s32 4294967295, %s1353_s30   ;;  %s1006_s10 = sadd.s32 4294967294, %s1353_s30   ;;  %s1353_s30 = sphi %s1411_s30, %s25_s30   ;;  %s1349_s29 = sphi %s1409_s29, %s1647_s29   ;;  %s1345_s28 = sphi %s1407_s28, %s1646_s28   ;;  %s1341_s27 = sphi %s1405_s27, %s1645_s27   ;;  %s1337_s26 = sphi %s1403_s26, %s1644_s26   ;;  %s1333_s2 = sphi %s1401_s2, %s1643_s2  }
   0xa   : > { %s37_s11 = sadd.s32 1, %s1349_s29  ;;  %s221_s12 = sadd.s32 1, %s1341_s27 }
   0xb   : > { %p39_p0 = scmp.ge.s32.totalorder %s37_s11, 2  ;;  %p231_p1 = scmp.ne.s32.totalorder %s1341_s27, %s1337_s26 }
   0xc   : > { %p232_p2 = scmp.eq.s32.totalorder %s1005_s9, 1  ;;  %p237_p3 = scmp.ne.s32.totalorder %s1337_s26, %s1333_s2 }
   0xd   : > { %s1649_s11 = smov (%p39_p0, %s37_s11), 0  ;;  %p238_p5 = scmp.eq.s32.totalorder %s1006_s10, 1 }
   0xe   : > { %p1441_p4 = por %p232_p2, %p231_p1  ;;  %s216_s14 = ssub.s32 %s1349_s29, %s1649_s11 }
   0xf   : > { %p1009_p6 = scmp.ge.s32.totalorder %s1353_s30, 1  ;;  %p219_p7 = scmp.eq.s32.totalorder %s216_s14, 0 }
  0x10   : > { %p1448_p8 = por %p238_p5, %p237_p3  ;;  %p324_p9 = scmp.lt.s32.totalorder %s1353_s30, 3 }
  0x11   : > { %s1454_s16 = scalar_select %p219_p7, %s1341_s27, %s221_s12  }
  0x12   : > { %p325_p10 = pnand %p1009_p6, %p324_p9 }
  0x13   : > { %p388_p11 = scmp.lt.s32.totalorder (!%p325_p10), %s1345_s28, 1  ;;  %s1641_s0 = sld [smem:[#allocation9_spill]] (!%p325_p10) }
  0x14   : > { %328 = sbr.rel (%p325_p10) target bundleno = 229 (0xe5), region = 44  ;;  %s1642_s3 = sld [smem:[#allocation10_spill]] (!%p325_p10) }
  0x15   : > { %s1564_s10 = sand.u32 (!%p325_p10), 1, %s1337_s26   ;;  %s821_s18 = scalar_lea.hbm (!%p325_p10), %s1635_s7, %s1345_s28 }
  0x16   : > { %s1573_s20 = sshll.u32 (!%p325_p10), %s821_s18, 4  ;;  %s1124_s21 = sshll.u32 (!%p325_p10), %s1345_s28, 1  ;;  %s826_s20 = int_to_ptr.hbm [resolvable:$true] %s1573_s20 }
  0x17   : > { %s836_s24 = scalar_lea.hbm (!%p325_p10), %s1636_s8, %s1124_s21  ;;  %s803_s25 = scalar_lea.sflag (!%p325_p10), [#allocation4], %s1564_s10 }
  0x18   : > { %s1263_s18 = scalar_lea.hbm (!%p325_p10), %s1635_s7, 2 }
  0x19   : > { %v1139_v0 = vld [vmem:[%s1633_s5 + $0x38] sm:$0xff]  ;;  %v1138_v3 = vld [vmem:[%s1633_s5 + $0x30] sm:$0xff]  ;;  %s1473_s9 = scalar_select %p388_p11, %s1345_s28, 1  ;;  %v419_v6 = vlaneseq  ;;  %v1137_v7 = vld [vmem:[%s1633_s5 + $0x28] sm:$0xff]  ;;  %v1355_v29 = vmov 0.0   ;;  %vm769_vm4 = vcmask 1040384  }
  0x1a   : > { %v1147_v1 = vld [vmem:[%s1633_s5 + $0x78] sm:$0xff]  ;;  %718 = vmatpush.bf16.msra.mxu0 %v1139_v0  ;;  %v1146_v4 = vld [vmem:[%s1633_s5 + $0x70] sm:$0xff]  ;;  %v1145_v8 = vld [vmem:[%s1633_s5 + $0x68] sm:$0xff]  ;;  %v473_v30 = vperm.slane %v1355_v29, 0  ;;  %vm770_vm5 = vsmask.f32 256 }
  0x1b   : > { %v1155_v2 = vld [vmem:[%s1633_s5 + $0xb8] sm:$0xff]  ;;  %732 = vmatpush.bf16.msra.mxu1 %v1147_v1  ;;  %v1154_v5 = vld [vmem:[%s1633_s5 + $0xb0] sm:$0xff]  ;;  %s1127_s14 = sshll.u32 %s1473_s9, 3  ;;  %v1153_v9 = vld [vmem:[%s1633_s5 + $0xa8] sm:$0xff]  ;;  %v420_v10 = vshrl.u32 %v419_v6, 7  ;;  %s379_s9 = scalar_lea.vmem [#allocation3], %s1564_s10 }
  0x1c   : > { %746 = vmatpush.bf16.msra.mxu2 %v1155_v2  ;;  %s395_s19 = scalar_lea.vmem %s1641_s0, %s1127_s14  ;;  %v1241_v14 = vld [vmem:[%s1642_s3] ss:$0 sm:$0xff]  ;;  %v1135_v24 = vld [vmem:[%s1633_s5 + $0x18] sm:$0xff]  ;;  %v1134_v35 = vld [vmem:[%s1633_s5 + $0x10] sm:$0xff]  ;;  %s417_s1 = scalar_lea.vmem %s1634_s6, %s1127_s14 }
  0x1d   : > { %v1493_v11 = vld [vmem:[%s395_s19] sm:$0xff]   ;;  %v421_v21 = vadd.s32 8, %v420_v10  ;;  %v1143_v25 = vld [vmem:[%s1633_s5 + $0x58] sm:$0xff]  ;;  %vm464_vm0 = vcmp.lt.s32.totalorder %v420_v10, 1  ;;  %vm467_vm1 = vcmp.eq.s32.totalorder %v420_v10, 0  ;;  %vm478_vm2 = vcmp.lt.s32.totalorder %v420_v10, 7  ;;  %vm771_vm6 = vmand %vm769_vm4, %vm770_vm5 }
  0x1e   : > { %719 = vmatpush.bf16.msra.mxu0 %v1138_v3  ;;  %v1158_v12 = vunpack.c.l.bf16 %v1493_v11  ;;  %v1159_v13 = vunpack.c.h.bf16 %v1493_v11  ;;  %v1242_v15 = vld [vmem:[%s1632_s4] ss:$0 sm:$0xff]  ;;  %v1151_v26 = vld [vmem:[%s1633_s5 + $0x98] sm:$0xff]  ;;  %v1142_v36 = vld [vmem:[%s1633_s5 + $0x50] sm:$0xff]  ;;  %s1571_s14 = sshll.u32 %s379_s9, 4  ;;  %s1010_s19 = sshll.u32 %s1564_s10, 1  ;;  %s824_s14 = int_to_ptr.vmem [resolvable:$true] %s1571_s14 }
  0x1f   : > { %733 = vmatpush.bf16.msra.mxu1 %v1146_v4  ;;  %v1136_v16 = vld [vmem:[%s1633_s5 + $0x20] sm:$0xff]  ;;  %vm482_vm3 = vcmp.eq.s32.totalorder %v421_v21, 15  ;;  %v1150_v37 = vld [vmem:[%s1633_s5 + $0x90] sm:$0xff]  ;;  %v1133_v48 = vld [vmem:[%s1633_s5 + $0x8] sm:$0xff] }
  0x20   : > { %747 = vmatpush.bf16.msra.mxu2 %v1154_v5  ;;  %v1144_v17 = vld [vmem:[%s1633_s5 + $0x60] sm:$0xff]  ;;  %v431_v19 = vmul.f32 %v1241_v14, %v1158_v12  ;;  %v432_v20 = vmul.f32 %v1241_v14, %v1159_v13  ;;  %v1141_v49 = vld [vmem:[%s1633_s5 + $0x48] sm:$0xff] }
  0x21   : > { %v1152_v18 = vld [vmem:[%s1633_s5 + $0xa0] sm:$0xff]  ;;  %v1149_v50 = vld [vmem:[%s1633_s5 + $0x88] sm:$0xff] }
  0x22   : > { %720 = vmatpush.bf16.msra.mxu0 %v1137_v7  ;;  %v436_v22 = vadd.f32 %v1242_v15, %v431_v19  ;;  %v437_v23 = vadd.f32 %v1242_v15, %v432_v20  ;;  %v1132_v51 = vld [vmem:[%s1633_s5] sm:$0xff] }
  0x23   : > { %734 = vmatpush.bf16.msra.mxu1 %v1145_v8  ;;  %v1140_v52 = vld [vmem:[%s1633_s5 + $0x40] sm:$0xff] }
  0x24   : > { %748 = vmatpush.bf16.msra.mxu2 %v1153_v9  ;;  %v438_v27 = vmax.f32 %v436_v22, 0.0  ;;  %v439_v28 = vmax.f32 %v437_v23, 0.0  ;;  %v1148_v53 = vld [vmem:[%s1633_s5 + $0x80] sm:$0xff] }
  0x26   : > { %721 = vmatpush.bf16.msra.mxu0 %v1136_v16  ;;  %v462_v31 = vrot.slane %v438_v27, 7  ;;  %v463_v32 = vrot.slane %v439_v28, 7  ;;  %v476_v33 = vrot.slane %v438_v27, 1  ;;  %v477_v34 = vrot.slane %v439_v28, 1 }
  0x27   : > { %735 = vmatpush.bf16.msra.mxu1 %v1144_v17 }
  0x28   : > { %749 = vmatpush.bf16.msra.mxu2 %v1152_v18  ;;  %v465_v38 = vsel %vm464_vm0, %v462_v31, %v463_v32  ;;  %v466_v39 = vsel %vm464_vm0, %v463_v32, %v462_v31  ;;  %v480_v40 = vsel %vm478_vm2, %v477_v34, %v476_v33  ;;  %v479_v41 = vsel %vm478_vm2, %v476_v33, %v477_v34 }
  0x29   : > { %v474_v42 = vsel %vm467_vm1, %v473_v30, %v466_v39  ;;  %v491_v43 = vpack.c.bf16 %v465_v38, %v465_v38  ;;  %v489_v44 = vsel %vm482_vm3, %v473_v30, %v480_v40  ;;  %v498_v47 = vpack.c.bf16 %v479_v41, %v479_v41 }
  0x2a   : > { %722 = vmatpush.bf16.msra.mxu0 %v1135_v24  ;;  %v1163_v45 = vpack.c.bf16 %v438_v27, %v474_v42  ;;  %v1168_v46 = vpack.c.bf16 %v489_v44, %v439_v28 }
  0x2b   : > { %736 = vmatpush.bf16.msra.mxu1 %v1143_v25  ;;  %493 = vst [vmem:[#allocation2 + $0xc] sm:$0xf] %v491_v43 }
  0x2c   : > { %750 = vmatpush.bf16.msra.mxu2 %v1151_v26  ;;  %1164 = vst [vmem:[#allocation2] sm:$0xff] %v1163_v45  }
  0x2d   : > { %1179 = vst [vmem:[#allocation2 + $0x10] sm:$0xff] %v1168_v46  }
  0x2e   : > { %723 = vmatpush.bf16.msra.mxu0 %v1134_v35  ;;  %500 = vst [vmem:[#allocation2 + $0x8] sm:$0xf] %v498_v47 }
  0x2f   : > { %737 = vmatpush.bf16.msra.mxu1 %v1142_v36 }
  0x30   : > { %751 = vmatpush.bf16.msra.mxu2 %v1150_v37 }
  0x32   : > { %724 = vmatpush.bf16.msra.mxu0 %v1133_v48  ;;  %v1130_v54 = vld [vmem:[#allocation2 + $0x8] sm:$0xf0] }
  0x33   : > { %738 = vmatpush.bf16.msra.mxu1 %v1141_v49  ;;  %v1017_v55 = vld [vmem:[#allocation2] sm:$0xf]  ;;  %v1129_v56 = vld [vmem:[#allocation2 + $0x4] sm:$0xf] }
  0x34   : > { %752 = vmatpush.bf16.msra.mxu2 %v1149_v50  ;;  %v1018_v57 = vor.u32 %v1130_v54, %v1017_v55  ;;  %v1019_v58 = vld [vmem:[#allocation2 + $0xc] sm:$0xf0]  ;;  %v1131_v59 = vld [vmem:[#allocation2 + $0x10] sm:$0xf0] }
  0x35   : > { %v1022_v60 = vor.u32 %v1129_v56, %v1019_v58  ;;  %v1025_v61 = vld [vmem:[#allocation2 + $0x8] sm:$0xf] }
  0x36   : > { %725 = vmatpush.bf16.msra.mxu0 %v1132_v51  ;;  %v1026_v62 = vor.u32 %v1131_v59, %v1025_v61 }
  0x37   : > { %739 = vmatpush.bf16.msra.mxu1 %v1140_v52 }
  0x38   : > { %753 = vmatpush.bf16.msra.mxu2 %v1148_v53 }
  0x39   : > { %726 = vmatmul.bf16.vlgmr.msra.gmra.mxu0 %v1018_v57 }
  0x3a   : > { %740 = vmatmul.bf16.vlgmr.msra.gmra.mxu1 %v1022_v60 }
  0x3b   : > { %754 = vmatmul.bf16.vlgmr.msra.gmra.mxu2 %v1026_v62 }
  0xb6   : > { %v727_v63 = vpop.f32.mrf.mxu0 }
  0xb7   : > { %v741_v0 = vpop.f32.mrf.mxu1  ;;  %v728_v1 = vadd.f32 %v1158_v12, %v727_v63 }
  0xb9   : > { %v742_v4 = vadd.f32 %v741_v0, %v728_v1 }
  0xbe   : > { %v755_v2 = vpop.f32.mrf.mxu2  ;;  %v729_v3 = vpop.f32.mrf.mxu0 }
  0xbf   : > { %v730_v5 = vadd.f32 %v1159_v13, %v729_v3  ;;  %v756_v6 = vadd.f32 %v755_v2, %v742_v4  ;;  %v743_v7 = vpop.f32.mrf.mxu1 }
  0xc1   : > { %v744_v8 = vadd.f32 %v743_v7, %v730_v5  ;;  %v781_v14 = vmul.f32 %v756_v6, %v756_v6  ;;  %v760_v22 = vpack.c.bf16 %v756_v6, %v756_v6 }
  0xc6   : > { %v757_v9 = vpop.f32.mrf.mxu2 }
  0xc7   : > { %v758_v10 = vadd.f32 %v757_v9, %v744_v8 }
  0xc9   : > { %v761_v12 = vpack.c.bf16 %v758_v10, %v758_v10  ;;  %v1177_v15 = vpack.c.bf16 %v758_v10, %v756_v6  ;;  %v774_v16 = vadd.f32 %v758_v10, %v756_v6  ;;  %v782_v17 = vmul.f32 %v758_v10, %v758_v10 }
  0xcb   : > { %1178 = vst [vmem:[%s417_s1] sm:$0xff] %v1177_v15   ;;  %v765_v11 = vunpack.c.l.b16 %v761_v12  ;;  %v775_v13 = vrot.slane %v774_v16, 4  ;;  %v783_v18 = vadd.f32 %v782_v17, %v781_v14  ;;  %s1257_s1 = sshra.s32 %s826_s20, 4  ;;  %s1258_s1 = int_to_ptr.hbm [resolvable:$true] %s1257_s1 }
  0xcc   : > { %s1259_s12 = scalar_lea.hbm %s1258_s1, 1  ;;  %p1264_p1 = scmp.lt.s32.totalorder %s1258_s1, %s1635_s7 }
  0xcd   : > { %v776_v19 = vadd.f32 %v775_v13, %v774_v16  ;;  %v784_v20 = vrot.slane %v783_v18, 4  ;;  %v766_v21 = vpack.c.b16 %v765_v11, %v765_v11  ;;  %p1260_p12 = scmp.ne.s32.totalorder %s1258_s1, %s1259_s12  ;;  %p1265_p2 = scmp.lt.s32.totalorder %s1263_s18, %s1259_s12 }
  0xcf   : > { %v777_v23 = vrot.slane %v776_v19, 2  ;;  %v785_v24 = vadd.f32 %v784_v20, %v783_v18  ;;  %v767_v25 = vrot.slane %v766_v21, 3  ;;  %p1261_p13 = pnand %p1260_p12, %p1441_p4  ;;  %p1266_p3 = por %p1265_p2, %p1264_p1 }
  0xd1   : > { %v772_v26 = vsel %vm771_vm6, %v760_v22, %v767_v25  ;;  %v778_v27 = vadd.f32 %v777_v23, %v776_v19  ;;  %v786_v28 = vrot.slane %v785_v24, 2  ;;  %p1262_p0 = pneg %p1261_p13 }
  0xd2   : > { %773 = vst [vmem:[%s379_s9] sm:$0x1] %v772_v26 }
  0xd3   : > { %p1267_p5 = pnand %p1266_p3, %p1262_p0 }
  0xd5   : > { %1270 = shalt.err (!%p1267_p5)
}
  0xd6   : > { %1180 = dma.vmem_to_hbm [thread:$0]  (%p1441_p4), %s824_s14, 16, %s826_s20, %s803_s25   ;;  %v779_v29 = vrot.slane %v778_v27, 1  ;;  %v787_v30 = vadd.f32 %v786_v28, %v785_v24 }
  0xd7   : > { %s386_s9 = scalar_lea.vmem [#allocation5], %s1010_s19  ;;  %s840_s22 = sshll.u32 %s836_s24, 4  ;;  %s841_s22 = int_to_ptr.hbm [resolvable:$true] %s840_s22 }
  0xd8   : > { %v788_v31 = vrot.slane %v787_v30, 1  ;;  %s838_s21 = sshll.u32 %s386_s9, 4  ;;  %v780_v32 = vadd.f32 %v779_v29, %v778_v27  ;;  %s807_s0 = scalar_lea.sflag [#allocation6], %s1564_s10  ;;  %s839_s21 = int_to_ptr.vmem [resolvable:$true] %s838_s21 }
  0xd9   : > { %s1285_s3 = sshra.s32 %s841_s22, 4  ;;  %s1291_s19 = scalar_lea.hbm %s1636_s8, 4  ;;  %s1286_s3 = int_to_ptr.hbm [resolvable:$true] %s1285_s3 }
  0xda   : > { %v789_v33 = vadd.f32 %v788_v31, %v787_v30  ;;  %s1287_s23 = scalar_lea.hbm %s1286_s3, 2  ;;  %p1292_p10 = scmp.lt.s32.totalorder %s1286_s3, %s1636_s8 }
  0xdb   : > { %p1288_p6 = scmp.ne.s32.totalorder %s1286_s3, %s1287_s23  ;;  %p1293_p11 = scmp.lt.s32.totalorder %s1291_s19, %s1287_s23 }
  0xdc   : > { %v791_v34 = vsel %vm769_vm4, %v780_v32, %v789_v33 }
  0xdd   : > { %792 = vst [vmem:[%s386_s9] sm:$0x3] %v791_v34  ;;  %p1289_p7 = pnand %p1288_p6, %p1441_p4  ;;  %p1294_p12 = por %p1293_p11, %p1292_p10 }
  0xdf   : > { %p1290_p9 = pneg %p1289_p7 }
  0xe1   : > { %p1295_p13 = pnand %p1294_p12, %p1290_p9 }
  0xe3   : > { %1298 = shalt.err (!%p1295_p13)
}
  0xe4   : > { %1181 = dma.vmem_to_hbm [thread:$0]  (%p1441_p4), %s839_s21, 32, %s841_s22, %s807_s0  }
  0xe5 PF: > { %p1191_p0 = scmp.ge.s32.totalorder %s1353_s30, 2  ;;  %s864_s10 = sand.u32 1, %s1333_s2  }
  0xe6   : > { %s865_s1 = scalar_lea.sflag [#allocation4], %s864_s10 }
  0xe7   : > { %p1185_p1 = pnand %p1191_p0, %p1448_p8 }
  0xe9   : > { %p1186_p2 = pneg %p1185_p1 }
  0xeb   : > { %1324 = dma.done.wait (%p1186_p2), %s865_s1, 16  }
  0xec   : > { %1326 = vsyncadd (%p1186_p2), %s865_s1, 4294967280  ;;  %s874_s12 = scalar_lea.sflag [#allocation6], %s864_s10 }
  0xed   : > { %1328 = dma.done.wait (%p1186_p2), %s874_s12, 32  }
  0xee   : > { %1330 = vsyncadd (%p1186_p2), %s874_s12, 4294967264  ;;  %s25_s30 = sadd.s32 1, %s1353_s30   ;;  %s1643_s2 = smov %s1337_s26 }
  0xef   : > { %p22_p3 = scmp.ge.s32.totalorder %s25_s30, 4   ;;  %s1644_s26 = smov %s1341_s27 }
  0xf0   : > { %s1645_s27 = smov %s1454_s16  ;;  %s1646_s28 = smov %s1349_s29 }
  0xf1   : > { %s1647_s29 = smov %s1649_s11  ;;  %24 = sbr.rel (!%p22_p3) target bundleno = 9 (0x9), region = 114 }
  0xf6   :  { %880 = vsyncpa [#allocation4], 1 }
  0xf7   :  { %882 = vsyncpa [#allocation4 + $0x1], 1 }
  0xf8   :  { %883 = vsyncpa [#allocation6], 1 }
  0xf9   :  { %885 = vsyncpa [#allocation6 + $0x1], 1 }

</bundles_post_ra>
